<compile_context>
chip_gen: v5e
topology: v5e:2x2
jax: 0.10.0
libtpu: 0.0.40
codegen_flags: <defaults>
</compile_context>

<pallas_src>
import jax
import jax.numpy as jnp
from jax.experimental import pallas as pl
from jax.experimental.pallas import tpu as pltpu

EMB = 256            # each submodel output dim
HID = EMB * 2        # 512 = regressor hidden width
OUT = 4              # regressor output classes
OUT_PAD = 128        # lane-dense padded output width


def _round_up(x, m):
    return ((x + m - 1) // m) * m


def _ensemble_kernel(v_ref, a_ref,            # [TB, Dv] bf16, [TB, Da] bf16
                     wv_ref, wa_ref,          # fused weights [Dv, 512], [Da, 512] bf16
                     b1_ref,                  # fused bias [1, 512] f32
                     w2_ref, b2_ref,          # [512, OUT_PAD] bf16, [1, OUT_PAD] f32
                     out_ref):                # [TB, OUT_PAD] f32
    # Fused first layer: h = relu(v @ W_vid + a @ W_aud + b_fused)
    # (two dots accumulated in f32 -> no concatenate, no [B,512] copy)
    h = jnp.dot(v_ref[...], wv_ref[...], preferred_element_type=jnp.float32)
    h = h + jnp.dot(a_ref[...], wa_ref[...], preferred_element_type=jnp.float32)
    h = jnp.maximum(h + b1_ref[...], 0.0)                                # [TB, 512] f32

    # Second regressor layer (padded to 128 output lanes for an unmasked store).
    o = jnp.dot(h.astype(w2_ref.dtype), w2_ref[...],
                preferred_element_type=jnp.float32) + b2_ref[...]        # [TB, OUT_PAD]
    out_ref[...] = o.astype(out_ref.dtype)


def prepare_params(params, compute_dtype=jnp.bfloat16):
    """One-time weight prep: transpose, algebraically fuse the linear submodels
    into the first regressor layer, pad the last layer to 128 lanes, cast to bf16.
    Done outside the per-call path."""
    w1v_t = params["w1v"].T.astype(jnp.float32)    # [Dv, 256]
    w1a_t = params["w1a"].T.astype(jnp.float32)    # [Da, 256]
    wr1_t = params["wr1"].T.astype(jnp.float32)    # [512, 512]  (in, out)
    wr2_t = params["wr2"].T.astype(jnp.float32)    # [512, 4]

    wr1_top = wr1_t[:EMB, :]                       # multiplies the video embedding
    wr1_bot = wr1_t[EMB:, :]                       # multiplies the audio embedding

    w_vid = w1v_t @ wr1_top                        # [Dv, 512]
    w_aud = w1a_t @ wr1_bot                        # [Da, 512]
    b_fused = (params["b1v"] @ wr1_top
               + params["b1a"] @ wr1_bot
               + params["br1"])                    # [512]

    w2_pad = jnp.zeros((HID, OUT_PAD), jnp.float32).at[:, :OUT].set(wr2_t)
    b2_pad = jnp.zeros((OUT_PAD,), jnp.float32).at[:OUT].set(params["br2"])

    return dict(
        w_vid=w_vid.astype(compute_dtype),
        w_aud=w_aud.astype(compute_dtype),
        b1=b_fused.reshape(1, HID).astype(jnp.float32),
        w2=w2_pad.astype(compute_dtype),
        b2=b2_pad.reshape(1, OUT_PAD).astype(jnp.float32),
    )


def ensemble_forward(video_embed, audio_embed, prepped, *, tb=256):
    """video_embed: [B, Dv] f32, audio_embed: [B, Da] f32 -> [B, 4] f32.

    tb: batch row-tile size.  256 keeps the v6e/v7x 256x256 MXU full; use a
    multiple of 128 (e.g. 512) on v5e.  Weights stay VMEM-resident across the
    batch grid; row tiles are double-buffered by the Pallas pipeline.
    """
    B, Dv = video_embed.shape
    _, Da = audio_embed.shape
    compute_dtype = prepped["w_vid"].dtype

    TB = min(tb, _round_up(B, 8))
    Bp = _round_up(B, TB)

    v = video_embed.astype(compute_dtype)
    a = audio_embed.astype(compute_dtype)
    if Bp != B:
        v = jnp.pad(v, ((0, Bp - B), (0, 0)))
        a = jnp.pad(a, ((0, Bp - B), (0, 0)))

    row = lambda d: pl.BlockSpec((TB, d), lambda i: (i, 0))       # batch-tiled
    fixed = lambda shape: pl.BlockSpec(shape, lambda i: (0, 0))   # VMEM-resident

    out_padded = pl.pallas_call(
        _ensemble_kernel,
        out_shape=jax.ShapeDtypeStruct((Bp, OUT_PAD), jnp.float32),
        grid=(Bp // TB,),
        in_specs=[
            row(Dv), row(Da),
            fixed((Dv, HID)), fixed((Da, HID)), fixed((1, HID)),
            fixed((HID, OUT_PAD)), fixed((1, OUT_PAD)),
        ],
        out_specs=pl.BlockSpec((TB, OUT_PAD), lambda i: (i, 0)),
        compiler_params=pltpu.CompilerParams(dimension_semantics=("parallel",)),
    )(v, a, prepped["w_vid"], prepped["w_aud"], prepped["b1"],
      prepped["w2"], prepped["b2"])

    return out_padded[:B, :OUT]


def init_params(key, video_dim, audio_dim):
    """Deterministic synthetic parameters (PyTorch [out, in] convention)."""
    ks = jax.random.split(key, 8)

    def lin(kw, kb, out_dim, in_dim):
        bound = 1.0 / jnp.sqrt(in_dim)
        w = jax.random.uniform(kw, (out_dim, in_dim), jnp.float32, -bound, bound)
        b = jax.random.uniform(kb, (out_dim,), jnp.float32, -bound, bound)
        return w, b

    w1v, b1v = lin(ks[0], ks[1], EMB, video_dim)
    w1a, b1a = lin(ks[2], ks[3], EMB, audio_dim)
    wr1, br1 = lin(ks[4], ks[5], HID, HID)
    wr2, br2 = lin(ks[6], ks[7], OUT, HID)
    return dict(w1v=w1v, b1v=b1v, w1a=w1a, b1a=b1a,
                wr1=wr1, br1=br1, wr2=wr2, br2=br2)


def reference_forward(video_embed, audio_embed, p):
    """Pure-JAX f32 reference mirroring the PyTorch forward exactly
    (unfused submodels + concat + regressor)."""
    v = video_embed @ p["w1v"].T + p["b1v"]
    a = audio_embed @ p["w1a"].T + p["b1a"]
    h = jnp.concatenate([v, a], axis=1)
    h = jnp.maximum(h @ p["wr1"].T + p["br1"], 0.0)
    return h @ p["wr2"].T + p["br2"]


if __name__ == "__main__":
    key = jax.random.PRNGKey(0)
    k_param, k_v, k_a = jax.random.split(key, 3)

    B, VIDEO_DIM, AUDIO_DIM = 8, 128, 128
    params = init_params(k_param, VIDEO_DIM, AUDIO_DIM)
    prepped = prepare_params(params)                 # one-time fuse/transpose/cast

    video_embed = jax.random.normal(k_v, (B, VIDEO_DIM), jnp.float32)
    audio_embed = jax.random.normal(k_a, (B, AUDIO_DIM), jnp.float32)

    out = ensemble_forward(video_embed, audio_embed, prepped)
    out = jax.block_until_ready(out)

    ref = reference_forward(video_embed, audio_embed, params)
    assert out.shape == (B, OUT)
    # bf16 operands (f32 accumulation) + offline weight fusion -> compare against
    # the strict f32 reference with a bf16-appropriate tolerance.
    assert jnp.allclose(out, ref, atol=5e-2, rtol=5e-2), "mismatch vs reference"

    print("KERNEL_OK")
</pallas_src>

<mosaic_0001>
module attributes {stable_mosaic.version = 11 : i64} {
  func.func @_ensemble_kernel(%arg0: i32, %arg1: memref<8x128xbf16, #tpu.memory_space<vmem>>, %arg2: memref<8x128xbf16, #tpu.memory_space<vmem>>, %arg3: memref<128x512xbf16, #tpu.memory_space<vmem>>, %arg4: memref<128x512xbf16, #tpu.memory_space<vmem>>, %arg5: memref<1x512xf32, #tpu.memory_space<vmem>>, %arg6: memref<512x128xbf16, #tpu.memory_space<vmem>>, %arg7: memref<1x128xf32, #tpu.memory_space<vmem>>, %arg8: memref<8x128xf32, #tpu.memory_space<vmem>>) attributes {dimension_semantics = [#tpu.dimension_semantics<parallel>], iteration_bounds = array<i64: 1>, scalar_prefetch = 0 : i64, scratch_operands = 0 : i64, tpu.core_type = #tpu.core_type<tc>, window_params = [{transform_indices = @transform_0, window_bounds = array<i64: 8, 128>}, {transform_indices = @transform_1, window_bounds = array<i64: 8, 128>}, {pipeline_mode = #tpu.pipeline_mode<synchronous>, transform_indices = @transform_2, window_bounds = array<i64: 128, 512>}, {pipeline_mode = #tpu.pipeline_mode<synchronous>, transform_indices = @transform_3, window_bounds = array<i64: 128, 512>}, {pipeline_mode = #tpu.pipeline_mode<synchronous>, transform_indices = @transform_4, window_bounds = array<i64: 1, 512>}, {pipeline_mode = #tpu.pipeline_mode<synchronous>, transform_indices = @transform_5, window_bounds = array<i64: 512, 128>}, {pipeline_mode = #tpu.pipeline_mode<synchronous>, transform_indices = @transform_6, window_bounds = array<i64: 1, 128>}, {transform_indices = @transform_7, window_bounds = array<i64: 8, 128>}]} {
    %c0 = arith.constant 0 : index
    %c0_0 = arith.constant 0 : index
    %0 = vector.load %arg1[%c0, %c0_0] : memref<8x128xbf16, #tpu.memory_space<vmem>>, vector<8x128xbf16>
    %c0_1 = arith.constant 0 : index
    %c0_2 = arith.constant 0 : index
    %1 = vector.load %arg3[%c0_1, %c0_2] : memref<128x512xbf16, #tpu.memory_space<vmem>>, vector<128x512xbf16>
    %cst = arith.constant dense<0.000000e+00> : vector<8x512xf32>
    %2 = tpu.matmul %0, %1, %cst {dimension_numbers = #tpu.dot_dimension_numbers<[1], [0], [0], [1], [0, 0, 1, 1], [], []>} : vector<8x128xbf16>, vector<128x512xbf16>, vector<8x512xf32> -> vector<8x512xf32>
    %c0_3 = arith.constant 0 : index
    %c0_4 = arith.constant 0 : index
    %3 = vector.load %arg2[%c0_3, %c0_4] : memref<8x128xbf16, #tpu.memory_space<vmem>>, vector<8x128xbf16>
    %c0_5 = arith.constant 0 : index
    %c0_6 = arith.constant 0 : index
    %4 = vector.load %arg4[%c0_5, %c0_6] : memref<128x512xbf16, #tpu.memory_space<vmem>>, vector<128x512xbf16>
    %cst_7 = arith.constant dense<0.000000e+00> : vector<8x512xf32>
    %5 = tpu.matmul %3, %4, %cst_7 {dimension_numbers = #tpu.dot_dimension_numbers<[1], [0], [0], [1], [0, 0, 1, 1], [], []>} : vector<8x128xbf16>, vector<128x512xbf16>, vector<8x512xf32> -> vector<8x512xf32>
    %6 = arith.addf %2, %5 : vector<8x512xf32>
    %c0_8 = arith.constant 0 : index
    %c0_9 = arith.constant 0 : index
    %7 = vector.load %arg5[%c0_8, %c0_9] : memref<1x512xf32, #tpu.memory_space<vmem>>, vector<1x512xf32>
    %8 = vector.broadcast %7 : vector<1x512xf32> to vector<8x512xf32>
    %9 = arith.addf %6, %8 : vector<8x512xf32>
    %cst_10 = arith.constant 0.000000e+00 : f32
    %10 = vector.broadcast %cst_10 : f32 to vector<8x512xf32>
    %11 = arith.maximumf %9, %10 : vector<8x512xf32>
    %12 = arith.truncf %11 : vector<8x512xf32> to vector<8x512xbf16>
    %c0_11 = arith.constant 0 : index
    %c0_12 = arith.constant 0 : index
    %13 = vector.load %arg6[%c0_11, %c0_12] : memref<512x128xbf16, #tpu.memory_space<vmem>>, vector<512x128xbf16>
    %cst_13 = arith.constant dense<0.000000e+00> : vector<8x128xf32>
    %14 = tpu.matmul %12, %13, %cst_13 {dimension_numbers = #tpu.dot_dimension_numbers<[1], [0], [0], [1], [0, 0, 1, 1], [], []>} : vector<8x512xbf16>, vector<512x128xbf16>, vector<8x128xf32> -> vector<8x128xf32>
    %c0_14 = arith.constant 0 : index
    %c0_15 = arith.constant 0 : index
    %15 = vector.load %arg7[%c0_14, %c0_15] : memref<1x128xf32, #tpu.memory_space<vmem>>, vector<1x128xf32>
    %16 = vector.broadcast %15 : vector<1x128xf32> to vector<8x128xf32>
    %17 = arith.addf %14, %16 : vector<8x128xf32>
    %c0_16 = arith.constant 0 : index
    %c0_17 = arith.constant 0 : index
    %18 = vector.load %arg8[%c0_16, %c0_17] : memref<8x128xf32, #tpu.memory_space<vmem>>, vector<8x128xf32>
    tpu.vector_store %arg8[%c0_16, %c0_17], %17 {strides = array<i32>} : memref<8x128xf32, #tpu.memory_space<vmem>>, vector<8x128xf32>,
    return
  }
  func.func @transform_0(%arg0: i32) -> (i32, i32) {
    %c0_i32 = arith.constant 0 : i32
    %c0_i32_0 = arith.constant 0 : i32
    return %arg0, %c0_i32 : i32, i32
  }
  func.func @transform_1(%arg0: i32) -> (i32, i32) {
    %c0_i32 = arith.constant 0 : i32
    %c0_i32_0 = arith.constant 0 : i32
    return %arg0, %c0_i32 : i32, i32
  }
  func.func @transform_2(%arg0: i32) -> (i32, i32) {
    %c0_i32 = arith.constant 0 : i32
    %c0_i32_0 = arith.constant 0 : i32
    %c0_i32_1 = arith.constant 0 : i32
    return %c0_i32, %c0_i32_0 : i32, i32
  }
  func.func @transform_3(%arg0: i32) -> (i32, i32) {
    %c0_i32 = arith.constant 0 : i32
    %c0_i32_0 = arith.constant 0 : i32
    %c0_i32_1 = arith.constant 0 : i32
    return %c0_i32, %c0_i32_0 : i32, i32
  }
  func.func @transform_4(%arg0: i32) -> (i32, i32) {
    %c0_i32 = arith.constant 0 : i32
    %c0_i32_0 = arith.constant 0 : i32
    %c0_i32_1 = arith.constant 0 : i32
    return %c0_i32, %c0_i32_0 : i32, i32
  }
  func.func @transform_5(%arg0: i32) -> (i32, i32) {
    %c0_i32 = arith.constant 0 : i32
    %c0_i32_0 = arith.constant 0 : i32
    %c0_i32_1 = arith.constant 0 : i32
    return %c0_i32, %c0_i32_0 : i32, i32
  }
  func.func @transform_6(%arg0: i32) -> (i32, i32) {
    %c0_i32 = arith.constant 0 : i32
    %c0_i32_0 = arith.constant 0 : i32
    %c0_i32_1 = arith.constant 0 : i32
    return %c0_i32, %c0_i32_0 : i32, i32
  }
  func.func @transform_7(%arg0: i32) -> (i32, i32) {
    %c0_i32 = arith.constant 0 : i32
    %c0_i32_0 = arith.constant 0 : i32
    return %arg0, %c0_i32 : i32, i32
  }
}

</mosaic_0001>

<bundles_post_ra>
// kernel: tpu_custom_call.1
= control target key start
LH: loop header
LB: loop body
LE: loop exit
PB: predicated region body
PF: predicated region fallthrough
CT: control target
= control target key end

     0   :  { %12 = vsyncpa [#allocation3], 0  ;;  %s1705_s0 = inlined_call_operand.hbm [shape: bf16[8,128], index: 0, kind: input, shape index: {}]   ;;  %s1706_s1 = inlined_call_operand.hbm [shape: bf16[8,128], index: 1, kind: input, shape index: {}]   ;;  %s1707_s2 = inlined_call_operand.hbm [shape: bf16[128,512], index: 2, kind: input, shape index: {}]   ;;  %s1708_s3 = inlined_call_operand.hbm [shape: bf16[128,512], index: 3, kind: input, shape index: {}]   ;;  %s1709_s4 = inlined_call_operand.hbm [shape: f32[1,512], index: 4, kind: input, shape index: {}]   ;;  %s1710_s5 = inlined_call_operand.hbm [shape: bf16[512,128], index: 5, kind: input, shape index: {}]   ;;  %s1711_s6 = inlined_call_operand.vmem [shape: f32[1,128], index: 6, kind: input, shape index: {}]   ;;  %s1712_s7 = inlined_call_operand.hbm [shape: f32[8,128], index: 7, kind: output, shape index: {}]  }
   0x1   :  { %13 = vsyncpa [#allocation6], 0 }
   0x2   :  { %14 = vsyncpa [#allocation9], 0 }
   0x3   :  { %15 = vsyncpa [#allocation12], 0  ;;  %s33_s26 = sshll.u32 %s1706_s1, 4  ;;  %s34_s26 = int_to_ptr.hbm [resolvable:$true] %s33_s26 }
   0x4   :  { %16 = vsyncpa [#allocation4], 0  ;;  %s1630_s27 = smov [#allocation5]   ;;  %s56_s8 = sshll.u32 %s1708_s3, 4  ;;  %s57_s8 = int_to_ptr.hbm [resolvable:$true] %s56_s8 }
   0x5   :  { %s35_s28 = sshll.u32 %s1630_s27, 4  ;;  %s1631_s9 = smov [#allocation8]   ;;  %s36_s28 = int_to_ptr.vmem [resolvable:$true] %s35_s28 }
   0x6   :  { %38 = dma.hbm_to_vmem [thread:$0]  %s34_s26, 64, %s36_s28, [#allocation6]  }
   0x7   :  { %s58_s10 = sshll.u32 %s1631_s9, 4  ;;  %s22_s13 = sshll.u32 %s1705_s0, 4  ;;  %s59_s10 = int_to_ptr.vmem [resolvable:$true] %s58_s10  ;;  %s23_s13 = int_to_ptr.hbm [resolvable:$true] %s22_s13 }
   0x8   :  { %s1632_s1 = smov 256   ;;  %s1633_s14 = smov 16  }
   0x9   :  { %64 = dma.hbm_to_vmem [thread:$0]  %s57_s8, 4096, %s59_s10, [#allocation9], %s1632_s1, %s1632_s1, %s1633_s14  }
   0xa   :  { %s43_s17 = sshll.u32 %s1707_s2, 4  ;;  %s1634_s18 = smov [#allocation2]   ;;  %s44_s17 = int_to_ptr.hbm [resolvable:$true] %s43_s17 }
   0xb   :  { %s24_s19 = sshll.u32 %s1634_s18, 4  ;;  %s1635_s3 = smov [#allocation7]   ;;  %s25_s19 = int_to_ptr.vmem [resolvable:$true] %s24_s19 }
   0xc   :  { %27 = dma.hbm_to_vmem [thread:$0]  %s23_s13, 64, %s25_s19, [#allocation3]  }
   0xd   :  { %s45_s20 = sshll.u32 %s1635_s3, 4  ;;  %s70_s0 = sshll.u32 %s1709_s4, 4  ;;  %s46_s20 = int_to_ptr.vmem [resolvable:$true] %s45_s20  ;;  %s71_s0 = int_to_ptr.hbm [resolvable:$true] %s70_s0 }
   0xe   :  { %51 = dma.hbm_to_vmem [thread:$0]  %s44_s17, 4096, %s46_s20, [#allocation6], %s1632_s1, %s1632_s1, %s1633_s14  }
   0xf   :  { %s80_s25 = sshll.u32 %s1710_s5, 4  ;;  %s1636_s26 = smov [#allocation10]   ;;  %s81_s25 = int_to_ptr.hbm [resolvable:$true] %s80_s25 }
  0x10   :  { %s72_s2 = sshll.u32 %s1636_s26, 4  ;;  %s1637_s27 = smov [#allocation11]   ;;  %s73_s2 = int_to_ptr.vmem [resolvable:$true] %s72_s2 }
  0x11   :  { %75 = dma.hbm_to_vmem [thread:$0]  %s71_s0, 64, %s73_s2, [#allocation9]  }
  0x12   :  { %s82_s28 = sshll.u32 %s1637_s27, 4  ;;  %s1638_s29 = smov 64   ;;  %s83_s28 = int_to_ptr.vmem [resolvable:$true] %s82_s28 }
  0x13   :  { %s1639_s30 = smov 4  }
  0x14   :  { %88 = dma.hbm_to_vmem [thread:$0]  %s81_s25, 4096, %s83_s28, [#allocation12], %s1638_s29, %s1638_s29, %s1639_s30  }
  0x15   :  { %1620 = dma.done.wait [#allocation3], 64  }
  0x16   :  { %1621 = vsyncadd [#allocation3], 4294967232 }
  0x17   :  { %1622 = dma.done.wait [#allocation6], 4160  }
  0x18   :  { %1623 = vsyncadd [#allocation6], 4294963136 }
  0x19   :  { %1624 = dma.done.wait [#allocation9], 4160  }
  0x1a   :  { %1625 = vsyncadd [#allocation9], 4294963136 }
  0x1b   :  { %1626 = dma.done.wait [#allocation12], 4096  }
  0x1c   :  { %1627 = vsyncadd [#allocation12], 4294963200  ;;  %v1074_v0 = vld [vmem:[#allocation8 + $0xe0] sm:$0xf]  ;;  %v1406_v1 = vld [vmem:[#allocation8 + $0xec] sm:$0xf0] }
  0x1d   :  { %v1404_v2 = vld [vmem:[#allocation8 + $0xe4] sm:$0xf]  ;;  %v1075_v3 = vor.u32 %v1406_v1, %v1074_v0  ;;  %v1076_v4 = vld [vmem:[#allocation8 + $0xf0] sm:$0xf0]  ;;  %v1082_v5 = vld [vmem:[#allocation8 + $0xe8] sm:$0xf] }
  0x1e   :  { %v1407_v6 = vld [vmem:[#allocation8 + $0xf4] sm:$0xf0]  ;;  %v1079_v7 = vor.u32 %v1404_v2, %v1076_v4  ;;  %v1405_v9 = vld [vmem:[#allocation8 + $0xec] sm:$0xf]  ;;  %v1084_v10 = vld [vmem:[#allocation8 + $0xf8] sm:$0xf0] }
  0x1f   :  { %v1083_v8 = vor.u32 %v1407_v6, %v1082_v5  ;;  %v1058_v11 = vld [vmem:[#allocation8 + $0xc0] sm:$0xf]  ;;  %341 = vmatpush.bf16.msra.mxu0 %v1075_v3  ;;  %v1087_v12 = vor.u32 %v1405_v9, %v1084_v10  ;;  %v1402_v13 = vld [vmem:[#allocation8 + $0xcc] sm:$0xf0]  ;;  %v1400_v14 = vld [vmem:[#allocation8 + $0xc4] sm:$0xf] }
  0x20   :  { %v1060_v15 = vld [vmem:[#allocation8 + $0xd0] sm:$0xf0]  ;;  %354 = vmatpush.bf16.msra.mxu1 %v1079_v7  ;;  %v1059_v16 = vor.u32 %v1402_v13, %v1058_v11  ;;  %v1066_v18 = vld [vmem:[#allocation8 + $0xc8] sm:$0xf]  ;;  %v1403_v19 = vld [vmem:[#allocation8 + $0xd4] sm:$0xf0] }
  0x21   :  { %367 = vmatpush.bf16.msra.mxu2 %v1083_v8  ;;  %v1063_v17 = vor.u32 %v1400_v14, %v1060_v15  ;;  %v1401_v20 = vld [vmem:[#allocation8 + $0xcc] sm:$0xf]  ;;  %380 = vmatpush.bf16.msra.mxu3 %v1087_v12  ;;  %v1067_v21 = vor.u32 %v1403_v19, %v1066_v18  ;;  %v1068_v22 = vld [vmem:[#allocation8 + $0xd8] sm:$0xf0]  ;;  %v1042_v23 = vld [vmem:[#allocation8 + $0xa0] sm:$0xf] }
  0x22   :  { %v1398_v24 = vld [vmem:[#allocation8 + $0xac] sm:$0xf0]  ;;  %v1071_v25 = vor.u32 %v1401_v20, %v1068_v22  ;;  %v1396_v26 = vld [vmem:[#allocation8 + $0xa4] sm:$0xf]  ;;  %v1044_v27 = vld [vmem:[#allocation8 + $0xb0] sm:$0xf0] }
  0x23   :  { %v1050_v28 = vld [vmem:[#allocation8 + $0xa8] sm:$0xf]  ;;  %342 = vmatpush.bf16.msra.mxu0 %v1059_v16  ;;  %v1043_v29 = vor.u32 %v1398_v24, %v1042_v23  ;;  %v1399_v30 = vld [vmem:[#allocation8 + $0xb4] sm:$0xf0]  ;;  %v1397_v31 = vld [vmem:[#allocation8 + $0xac] sm:$0xf]  ;;  %v1047_v33 = vor.u32 %v1396_v26, %v1044_v27 }
  0x24   :  { %v1052_v32 = vld [vmem:[#allocation8 + $0xb8] sm:$0xf0]  ;;  %355 = vmatpush.bf16.msra.mxu1 %v1063_v17  ;;  %v1051_v34 = vor.u32 %v1399_v30, %v1050_v28  ;;  %v1026_v35 = vld [vmem:[#allocation8 + $0x80] sm:$0xf]  ;;  %v1394_v36 = vld [vmem:[#allocation8 + $0x8c] sm:$0xf0] }
  0x25   :  { %368 = vmatpush.bf16.msra.mxu2 %v1067_v21  ;;  %v1392_v37 = vld [vmem:[#allocation8 + $0x84] sm:$0xf]  ;;  %381 = vmatpush.bf16.msra.mxu3 %v1071_v25  ;;  %v1055_v38 = vor.u32 %v1397_v31, %v1052_v32  ;;  %v1028_v39 = vld [vmem:[#allocation8 + $0x90] sm:$0xf0]  ;;  %v1034_v40 = vld [vmem:[#allocation8 + $0x88] sm:$0xf]  ;;  %v1027_v44 = vor.u32 %v1394_v36, %v1026_v35 }
  0x26   :  { %v1395_v41 = vld [vmem:[#allocation8 + $0x94] sm:$0xf0]  ;;  %v1393_v42 = vld [vmem:[#allocation8 + $0x8c] sm:$0xf]  ;;  %v1036_v43 = vld [vmem:[#allocation8 + $0x98] sm:$0xf0]  ;;  %v1031_v45 = vor.u32 %v1392_v37, %v1028_v39 }
  0x27   :  { %343 = vmatpush.bf16.msra.mxu0 %v1043_v29  ;;  %v1035_v46 = vor.u32 %v1395_v41, %v1034_v40  ;;  %v1010_v47 = vld [vmem:[#allocation8 + $0x60] sm:$0xf]  ;;  %v1390_v48 = vld [vmem:[#allocation8 + $0x6c] sm:$0xf0]  ;;  %v1388_v49 = vld [vmem:[#allocation8 + $0x64] sm:$0xf]  ;;  %v1039_v50 = vor.u32 %v1393_v42, %v1036_v43 }
  0x28   :  { %356 = vmatpush.bf16.msra.mxu1 %v1047_v33  ;;  %v1012_v51 = vld [vmem:[#allocation8 + $0x70] sm:$0xf0]  ;;  %v1018_v52 = vld [vmem:[#allocation8 + $0x68] sm:$0xf]  ;;  %v1391_v53 = vld [vmem:[#allocation8 + $0x74] sm:$0xf0]  ;;  %v1011_v56 = vor.u32 %v1390_v48, %v1010_v47 }
  0x29   :  { %369 = vmatpush.bf16.msra.mxu2 %v1051_v34  ;;  %382 = vmatpush.bf16.msra.mxu3 %v1055_v38  ;;  %v1389_v54 = vld [vmem:[#allocation8 + $0x6c] sm:$0xf]  ;;  %v1020_v55 = vld [vmem:[#allocation8 + $0x78] sm:$0xf0]  ;;  %v1015_v57 = vor.u32 %v1388_v49, %v1012_v51  ;;  %v1019_v58 = vor.u32 %v1391_v53, %v1018_v52  ;;  %v994_v59 = vld [vmem:[#allocation8 + $0x40] sm:$0xf] }
  0x2a   :  { %v1386_v60 = vld [vmem:[#allocation8 + $0x4c] sm:$0xf0]  ;;  %v1384_v61 = vld [vmem:[#allocation8 + $0x44] sm:$0xf]  ;;  %v1023_v62 = vor.u32 %v1389_v54, %v1020_v55  ;;  %v996_v63 = vld [vmem:[#allocation8 + $0x50] sm:$0xf0] }
  0x2b   :  { %344 = vmatpush.bf16.msra.mxu0 %v1027_v44  ;;  %v1002_v0 = vld [vmem:[#allocation8 + $0x48] sm:$0xf]  ;;  %v1387_v1 = vld [vmem:[#allocation8 + $0x54] sm:$0xf0]  ;;  %v1385_v2 = vld [vmem:[#allocation8 + $0x4c] sm:$0xf]  ;;  %v995_v4 = vor.u32 %v1386_v60, %v994_v59  ;;  %v999_v5 = vor.u32 %v1384_v61, %v996_v63 }
  0x2c   :  { %357 = vmatpush.bf16.msra.mxu1 %v1031_v45  ;;  %v1004_v3 = vld [vmem:[#allocation8 + $0x58] sm:$0xf0]  ;;  %v1003_v6 = vor.u32 %v1387_v1, %v1002_v0  ;;  %v978_v7 = vld [vmem:[#allocation8 + $0x20] sm:$0xf]  ;;  %v1382_v8 = vld [vmem:[#allocation8 + $0x2c] sm:$0xf0] }
  0x2d   :  { %370 = vmatpush.bf16.msra.mxu2 %v1035_v46  ;;  %383 = vmatpush.bf16.msra.mxu3 %v1039_v50  ;;  %v1380_v9 = vld [vmem:[#allocation8 + $0x24] sm:$0xf]  ;;  %v1007_v10 = vor.u32 %v1385_v2, %v1004_v3  ;;  %v980_v11 = vld [vmem:[#allocation8 + $0x30] sm:$0xf0]  ;;  %v986_v12 = vld [vmem:[#allocation8 + $0x28] sm:$0xf]  ;;  %v979_v16 = vor.u32 %v1382_v8, %v978_v7 }
  0x2e   :  { %v1383_v13 = vld [vmem:[#allocation8 + $0x34] sm:$0xf0]  ;;  %v1381_v14 = vld [vmem:[#allocation8 + $0x2c] sm:$0xf]  ;;  %v988_v15 = vld [vmem:[#allocation8 + $0x38] sm:$0xf0]  ;;  %v983_v19 = vor.u32 %v1380_v9, %v980_v11 }
  0x2f   :  { %345 = vmatpush.bf16.msra.mxu0 %v1011_v56  ;;  %v962_v17 = vld [vmem:[#allocation8] sm:$0xf]  ;;  %v1378_v18 = vld [vmem:[#allocation8 + $0xc] sm:$0xf0]  ;;  %v987_v20 = vor.u32 %v1383_v13, %v986_v12  ;;  %v1376_v21 = vld [vmem:[#allocation8 + $0x4] sm:$0xf]  ;;  %v991_v24 = vor.u32 %v1381_v14, %v988_v15 }
  0x30   :  { %358 = vmatpush.bf16.msra.mxu1 %v1015_v57  ;;  %v964_v22 = vld [vmem:[#allocation8 + $0x10] sm:$0xf0]  ;;  %v970_v23 = vld [vmem:[#allocation8 + $0x8] sm:$0xf]  ;;  %v1379_v25 = vld [vmem:[#allocation8 + $0x14] sm:$0xf0]  ;;  %v963_v31 = vor.u32 %v1378_v18, %v962_v17 }
  0x31   :  { %371 = vmatpush.bf16.msra.mxu2 %v1019_v58  ;;  %384 = vmatpush.bf16.msra.mxu3 %v1023_v62  ;;  %v1377_v26 = vld [vmem:[#allocation8 + $0xc] sm:$0xf]  ;;  %v972_v27 = vld [vmem:[#allocation8 + $0x18] sm:$0xf0]  ;;  %v1202_v28 = vld [vmem:[#allocation7 + $0xe0] sm:$0xf]  ;;  %v967_v35 = vor.u32 %v1376_v21, %v964_v22  ;;  %v971_v36 = vor.u32 %v1379_v25, %v970_v23 }
  0x32   :  { %v1374_v29 = vld [vmem:[#allocation7 + $0xec] sm:$0xf0]  ;;  %v1372_v30 = vld [vmem:[#allocation7 + $0xe4] sm:$0xf]  ;;  %v1204_v32 = vld [vmem:[#allocation7 + $0xf0] sm:$0xf0]  ;;  %v975_v39 = vor.u32 %v1377_v26, %v972_v27 }
  0x33   :  { %346 = vmatpush.bf16.msra.mxu0 %v995_v4  ;;  %v1210_v33 = vld [vmem:[#allocation7 + $0xe8] sm:$0xf]  ;;  %v1375_v34 = vld [vmem:[#allocation7 + $0xf4] sm:$0xf0]  ;;  %v1373_v37 = vld [vmem:[#allocation7 + $0xec] sm:$0xf]  ;;  %v1203_v40 = vor.u32 %v1374_v29, %v1202_v28  ;;  %v1207_v41 = vor.u32 %v1372_v30, %v1204_v32 }
  0x34   :  { %359 = vmatpush.bf16.msra.mxu1 %v999_v5  ;;  %v1212_v38 = vld [vmem:[#allocation7 + $0xf8] sm:$0xf0]  ;;  %v1211_v42 = vor.u32 %v1375_v34, %v1210_v33  ;;  %v1186_v43 = vld [vmem:[#allocation7 + $0xc0] sm:$0xf]  ;;  %v1370_v44 = vld [vmem:[#allocation7 + $0xcc] sm:$0xf0] }
  0x35   :  { %372 = vmatpush.bf16.msra.mxu2 %v1003_v6  ;;  %385 = vmatpush.bf16.msra.mxu3 %v1007_v10  ;;  %v1368_v45 = vld [vmem:[#allocation7 + $0xc4] sm:$0xf]  ;;  %v1215_v46 = vor.u32 %v1373_v37, %v1212_v38  ;;  %v1188_v47 = vld [vmem:[#allocation7 + $0xd0] sm:$0xf0]  ;;  %v1194_v48 = vld [vmem:[#allocation7 + $0xc8] sm:$0xf]  ;;  %v1187_v53 = vor.u32 %v1370_v44, %v1186_v43 }
  0x36   :  { %v1371_v49 = vld [vmem:[#allocation7 + $0xd4] sm:$0xf0]  ;;  %v1369_v50 = vld [vmem:[#allocation7 + $0xcc] sm:$0xf]  ;;  %v1196_v51 = vld [vmem:[#allocation7 + $0xd8] sm:$0xf0]  ;;  %v1191_v54 = vor.u32 %v1368_v45, %v1188_v47 }
  0x37   :  { %347 = vmatpush.bf16.msra.mxu0 %v979_v16  ;;  %v148_v52 = vld [vmem:[#allocation5] sm:$0xf]  ;;  %v1195_v55 = vor.u32 %v1371_v49, %v1194_v48  ;;  %v1170_v56 = vld [vmem:[#allocation7 + $0xa0] sm:$0xf]  ;;  %v1366_v57 = vld [vmem:[#allocation7 + $0xac] sm:$0xf0]  ;;  %v1199_v59 = vor.u32 %v1369_v50, %v1196_v51 }
  0x38   :  { %360 = vmatpush.bf16.msra.mxu1 %v983_v19  ;;  %v1364_v58 = vld [vmem:[#allocation7 + $0xa4] sm:$0xf]  ;;  %v1172_v60 = vld [vmem:[#allocation7 + $0xb0] sm:$0xf0]  ;;  %v1178_v61 = vld [vmem:[#allocation7 + $0xa8] sm:$0xf]  ;;  %v1171_v1 = vor.u32 %v1366_v57, %v1170_v56 }
  0x39   :  { %373 = vmatpush.bf16.msra.mxu2 %v987_v20  ;;  %386 = vmatpush.bf16.msra.mxu3 %v991_v24  ;;  %v1367_v62 = vld [vmem:[#allocation7 + $0xb4] sm:$0xf0]  ;;  %v1365_v63 = vld [vmem:[#allocation7 + $0xac] sm:$0xf]  ;;  %v1180_v0 = vld [vmem:[#allocation7 + $0xb8] sm:$0xf0]  ;;  %v1175_v2 = vor.u32 %v1364_v58, %v1172_v60 }
  0x3a   :  { %v1179_v3 = vor.u32 %v1367_v62, %v1178_v61  ;;  %v1154_v4 = vld [vmem:[#allocation7 + $0x80] sm:$0xf]  ;;  %v1362_v5 = vld [vmem:[#allocation7 + $0x8c] sm:$0xf0]  ;;  %v1360_v6 = vld [vmem:[#allocation7 + $0x84] sm:$0xf]  ;;  %v1183_v7 = vor.u32 %v1365_v63, %v1180_v0 }
  0x3b   :  { %348 = vmatpush.bf16.msra.mxu0 %v963_v31  ;;  %v1156_v8 = vld [vmem:[#allocation7 + $0x90] sm:$0xf0]  ;;  %v1162_v9 = vld [vmem:[#allocation7 + $0x88] sm:$0xf]  ;;  %v1363_v10 = vld [vmem:[#allocation7 + $0x94] sm:$0xf0]  ;;  %v1155_v13 = vor.u32 %v1362_v5, %v1154_v4 }
  0x3c   :  { %361 = vmatpush.bf16.msra.mxu1 %v967_v35  ;;  %v1361_v11 = vld [vmem:[#allocation7 + $0x8c] sm:$0xf]  ;;  %v1164_v12 = vld [vmem:[#allocation7 + $0x98] sm:$0xf0]  ;;  %v1159_v14 = vor.u32 %v1360_v6, %v1156_v8  ;;  %v1163_v15 = vor.u32 %v1363_v10, %v1162_v9  ;;  %v1138_v16 = vld [vmem:[#allocation7 + $0x60] sm:$0xf] }
  0x3d   :  { %374 = vmatpush.bf16.msra.mxu2 %v971_v36  ;;  %387 = vmatpush.bf16.msra.mxu3 %v975_v39  ;;  %v1358_v17 = vld [vmem:[#allocation7 + $0x6c] sm:$0xf0]  ;;  %v1356_v18 = vld [vmem:[#allocation7 + $0x64] sm:$0xf]  ;;  %v1167_v19 = vor.u32 %v1361_v11, %v1164_v12  ;;  %v1140_v20 = vld [vmem:[#allocation7 + $0x70] sm:$0xf0] }
  0x3e   :  { %349 = vmatmul.bf16.vlgmr.msra.gmra.mxu0 %v148_v52  ;;  %v1146_v21 = vld [vmem:[#allocation7 + $0x68] sm:$0xf]  ;;  %v1359_v22 = vld [vmem:[#allocation7 + $0x74] sm:$0xf0]  ;;  %v1357_v23 = vld [vmem:[#allocation7 + $0x6c] sm:$0xf]  ;;  %v1139_v25 = vor.u32 %v1358_v17, %v1138_v16  ;;  %v1143_v26 = vor.u32 %v1356_v18, %v1140_v20 }
  0x3f   :  { %553 = vmatpush.bf16.msrb.mxu0 %v1203_v40  ;;  %362 = vmatmul.bf16.vlgmr.msra.gmra.mxu1 %v148_v52  ;;  %v1148_v24 = vld [vmem:[#allocation7 + $0x78] sm:$0xf0]  ;;  %v1147_v27 = vor.u32 %v1359_v22, %v1146_v21  ;;  %v1122_v28 = vld [vmem:[#allocation7 + $0x40] sm:$0xf]  ;;  %v1354_v29 = vld [vmem:[#allocation7 + $0x4c] sm:$0xf0] }
  0x40   :  { %566 = vmatpush.bf16.msrb.mxu1 %v1207_v41  ;;  %375 = vmatmul.bf16.vlgmr.msra.gmra.mxu2 %v148_v52  ;;  %v1352_v30 = vld [vmem:[#allocation7 + $0x44] sm:$0xf]  ;;  %v1151_v31 = vor.u32 %v1357_v23, %v1148_v24  ;;  %v1124_v32 = vld [vmem:[#allocation7 + $0x50] sm:$0xf0]  ;;  %v1130_v33 = vld [vmem:[#allocation7 + $0x48] sm:$0xf]  ;;  %v1123_v37 = vor.u32 %v1354_v29, %v1122_v28 }
  0x41   :  { %579 = vmatpush.bf16.msrb.mxu2 %v1211_v42  ;;  %592 = vmatpush.bf16.msrb.mxu3 %v1215_v46  ;;  %v1355_v34 = vld [vmem:[#allocation7 + $0x54] sm:$0xf0]  ;;  %v1353_v35 = vld [vmem:[#allocation7 + $0x4c] sm:$0xf]  ;;  %v1132_v36 = vld [vmem:[#allocation7 + $0x58] sm:$0xf0]  ;;  %v1127_v38 = vor.u32 %v1352_v30, %v1124_v32 }
  0x42   :  { %388 = vmatmul.bf16.vlgmr.msra.gmra.mxu3 %v148_v52  ;;  %v1131_v39 = vor.u32 %v1355_v34, %v1130_v33  ;;  %v1106_v40 = vld [vmem:[#allocation7 + $0x20] sm:$0xf]  ;;  %v1350_v41 = vld [vmem:[#allocation7 + $0x2c] sm:$0xf0]  ;;  %v1348_v42 = vld [vmem:[#allocation7 + $0x24] sm:$0xf]  ;;  %v1135_v43 = vor.u32 %v1353_v35, %v1132_v36 }
  0x43   :  { %554 = vmatpush.bf16.msrb.mxu0 %v1187_v53  ;;  %v1108_v44 = vld [vmem:[#allocation7 + $0x30] sm:$0xf0]  ;;  %v1114_v45 = vld [vmem:[#allocation7 + $0x28] sm:$0xf]  ;;  %v1351_v46 = vld [vmem:[#allocation7 + $0x34] sm:$0xf0]  ;;  %v1107_v49 = vor.u32 %v1350_v41, %v1106_v40 }
  0x44   :  { %567 = vmatpush.bf16.msrb.mxu1 %v1191_v54  ;;  %v1349_v47 = vld [vmem:[#allocation7 + $0x2c] sm:$0xf]  ;;  %v1116_v48 = vld [vmem:[#allocation7 + $0x38] sm:$0xf0]  ;;  %v1111_v50 = vor.u32 %v1348_v42, %v1108_v44  ;;  %v1115_v51 = vor.u32 %v1351_v46, %v1114_v45  ;;  %v1090_v52 = vld [vmem:[#allocation7] sm:$0xf] }
  0x45   :  { %580 = vmatpush.bf16.msrb.mxu2 %v1195_v55  ;;  %593 = vmatpush.bf16.msrb.mxu3 %v1199_v59  ;;  %v1346_v53 = vld [vmem:[#allocation7 + $0xc] sm:$0xf0]  ;;  %v1344_v54 = vld [vmem:[#allocation7 + $0x4] sm:$0xf]  ;;  %v1119_v55 = vor.u32 %v1349_v47, %v1116_v48  ;;  %v1092_v56 = vld [vmem:[#allocation7 + $0x10] sm:$0xf0] }
  0x46   :  { %v1098_v57 = vld [vmem:[#allocation7 + $0x8] sm:$0xf]  ;;  %v1347_v58 = vld [vmem:[#allocation7 + $0x14] sm:$0xf0]  ;;  %v1345_v59 = vld [vmem:[#allocation7 + $0xc] sm:$0xf]  ;;  %v1091_v61 = vor.u32 %v1346_v53, %v1090_v52  ;;  %v1095_v62 = vor.u32 %v1344_v54, %v1092_v56 }
  0x47   :  { %555 = vmatpush.bf16.msrb.mxu0 %v1171_v1  ;;  %v1100_v60 = vld [vmem:[#allocation7 + $0x18] sm:$0xf0]  ;;  %v1099_v63 = vor.u32 %v1347_v58, %v1098_v57  ;;  %v1414_v4 = vld [vmem:[#allocation11 + $0x30] sm:$0xff]  ;;  %v1413_v8 = vld [vmem:[#allocation11 + $0x28] sm:$0xff]  ;;  %s1640_s8 = smov [#allocation13]   ;;  %s947_s12 = sshll.u32 %s1712_s7, 4  ;;  %s948_s12 = int_to_ptr.hbm [resolvable:$true] %s947_s12 }
  0x48   :  { %568 = vmatpush.bf16.msrb.mxu1 %v1175_v2  ;;  %v1103_v0 = vor.u32 %v1345_v59, %v1100_v60  ;;  %v1415_v1 = vld [vmem:[#allocation11 + $0x38] sm:$0xff]  ;;  %v1422_v5 = vld [vmem:[#allocation11 + $0x70] sm:$0xff]  ;;  %v1421_v9 = vld [vmem:[#allocation11 + $0x68] sm:$0xff]  ;;  %s945_s9 = sshll.u32 %s1640_s8, 4  ;;  %s946_s9 = int_to_ptr.vmem [resolvable:$true] %s945_s9 }
  0x49   :  { %581 = vmatpush.bf16.msrb.mxu2 %v1179_v3  ;;  %594 = vmatpush.bf16.msrb.mxu3 %v1183_v7  ;;  %v1423_v2 = vld [vmem:[#allocation11 + $0x78] sm:$0xff]  ;;  %v115_v3 = vld [vmem:[#allocation2] sm:$0xf]  ;;  %v1412_v12 = vld [vmem:[#allocation11 + $0x20] sm:$0xff] }
  0x4a   :  { %v1431_v6 = vld [vmem:[#allocation11 + $0xb8] sm:$0xff]  ;;  %v1430_v10 = vld [vmem:[#allocation11 + $0xb0] sm:$0xff]  ;;  %v1428_v18 = vld [vmem:[#allocation11 + $0xa0] sm:$0xff] }
  0x4b   :  { %556 = vmatpush.bf16.msrb.mxu0 %v1155_v13  ;;  %v1439_v7 = vld [vmem:[#allocation11 + $0xf8] sm:$0xff]  ;;  %v1438_v11 = vld [vmem:[#allocation11 + $0xf0] sm:$0xff]  ;;  %v1420_v13 = vld [vmem:[#allocation11 + $0x60] sm:$0xff] }
  0x4c   :  { %569 = vmatpush.bf16.msrb.mxu1 %v1159_v14  ;;  %v1429_v14 = vld [vmem:[#allocation11 + $0xa8] sm:$0xff]  ;;  %v1411_v16 = vld [vmem:[#allocation11 + $0x18] sm:$0xff]  ;;  %v1410_v20 = vld [vmem:[#allocation11 + $0x10] sm:$0xff] }
  0x4d   :  { %582 = vmatpush.bf16.msrb.mxu2 %v1163_v15  ;;  %595 = vmatpush.bf16.msrb.mxu3 %v1167_v19  ;;  %v1437_v15 = vld [vmem:[#allocation11 + $0xe8] sm:$0xff]  ;;  %v1419_v17 = vld [vmem:[#allocation11 + $0x58] sm:$0xff]  ;;  %v1436_v19 = vld [vmem:[#allocation11 + $0xe0] sm:$0xff] }
  0x4e   :  { %v1418_v21 = vld [vmem:[#allocation11 + $0x50] sm:$0xff]  ;;  %v1427_v22 = vld [vmem:[#allocation11 + $0x98] sm:$0xff]  ;;  %v1409_v24 = vld [vmem:[#allocation11 + $0x8] sm:$0xff] }
  0x4f   :  { %557 = vmatpush.bf16.msrb.mxu0 %v1139_v25  ;;  %v1435_v23 = vld [vmem:[#allocation11 + $0xd8] sm:$0xff]  ;;  %v1417_v25 = vld [vmem:[#allocation11 + $0x48] sm:$0xff]  ;;  %v1434_v28 = vld [vmem:[#allocation11 + $0xd0] sm:$0xff] }
  0x50   :  { %570 = vmatpush.bf16.msrb.mxu1 %v1143_v26  ;;  %v1408_v30 = vld [vmem:[#allocation11] sm:$0xff]  ;;  %v1425_v32 = vld [vmem:[#allocation11 + $0x88] sm:$0xff]  ;;  %v605_v42 = vld [vmem:[#allocation10] sm:$0xf] }
  0x51   :  { %583 = vmatpush.bf16.msrb.mxu2 %v1147_v27  ;;  %596 = vmatpush.bf16.msrb.mxu3 %v1151_v31  ;;  %v1426_v27 = vld [vmem:[#allocation11 + $0x90] sm:$0xff]  ;;  %v1416_v31 = vld [vmem:[#allocation11 + $0x40] sm:$0xff]  ;;  %v1433_v33 = vld [vmem:[#allocation11 + $0xc8] sm:$0xff]  ;;  %v608_v45 = vperm.slane %v605_v42, 1  ;;  %v609_v53 = vperm.slane %v605_v42, 2  ;;  %v610_v56 = vperm.slane %v605_v42, 3 }
  0x53   :  { %558 = vmatpush.bf16.msrb.mxu0 %v1123_v37  ;;  %v1424_v37 = vld [vmem:[#allocation11 + $0x80] sm:$0xff] }
  0x54   :  { %571 = vmatpush.bf16.msrb.mxu1 %v1127_v38  ;;  %v1432_v38 = vld [vmem:[#allocation11 + $0xc0] sm:$0xff] }
  0x55   :  { %584 = vmatpush.bf16.msrb.mxu2 %v1131_v39  ;;  %597 = vmatpush.bf16.msrb.mxu3 %v1135_v43  ;;  %v607_v43 = vperm.slane %v605_v42, 0 }
  0x57   :  { %559 = vmatpush.bf16.msrb.mxu0 %v1107_v49 }
  0x58   :  { %572 = vmatpush.bf16.msrb.mxu1 %v1111_v50 }
  0x59   :  { %585 = vmatpush.bf16.msrb.mxu2 %v1115_v51  ;;  %598 = vmatpush.bf16.msrb.mxu3 %v1119_v55 }
  0x5b   :  { %560 = vmatpush.bf16.msrb.mxu0 %v1091_v61 }
  0x5c   :  { %573 = vmatpush.bf16.msrb.mxu1 %v1095_v62 }
  0x5d   :  { %586 = vmatpush.bf16.msrb.mxu2 %v1099_v63  ;;  %599 = vmatpush.bf16.msrb.mxu3 %v1103_v0 }
  0x5e   :  { %561 = vmatmul.bf16.vlgmr.msrb.gmra.mxu0 %v115_v3 }
  0x5f   :  { %887 = vmatpush.bf16.msra.mxu0 %v1415_v1  ;;  %574 = vmatmul.bf16.vlgmr.msrb.gmra.mxu1 %v115_v3 }
  0x60   :  { %900 = vmatpush.bf16.msra.mxu1 %v1423_v2  ;;  %587 = vmatmul.bf16.vlgmr.msrb.gmra.mxu2 %v115_v3 }
  0x61   :  { %600 = vmatmul.bf16.vlgmr.msrb.gmra.mxu3 %v115_v3  ;;  %913 = vmatpush.bf16.msra.mxu2 %v1431_v6 }
  0x62   :  { %926 = vmatpush.bf16.msra.mxu3 %v1439_v7 }
  0x63   :  { %888 = vmatpush.bf16.msra.mxu0 %v1414_v4 }
  0x64   :  { %901 = vmatpush.bf16.msra.mxu1 %v1422_v5 }
  0x65   :  { %914 = vmatpush.bf16.msra.mxu2 %v1430_v10 }
  0x66   :  { %927 = vmatpush.bf16.msra.mxu3 %v1438_v11 }
  0x67   :  { %889 = vmatpush.bf16.msra.mxu0 %v1413_v8 }
  0x68   :  { %902 = vmatpush.bf16.msra.mxu1 %v1421_v9  ;;  %v1451_v9 = vld [vmem:[%s1711_s6] ss:$0 sm:$0xff] }
  0x69   :  { %915 = vmatpush.bf16.msra.mxu2 %v1429_v14 }
  0x6a   :  { %928 = vmatpush.bf16.msra.mxu3 %v1437_v15 }
  0x6b   :  { %890 = vmatpush.bf16.msra.mxu0 %v1412_v12 }
  0x6c   :  { %903 = vmatpush.bf16.msra.mxu1 %v1420_v13 }
  0x6d   :  { %916 = vmatpush.bf16.msra.mxu2 %v1428_v18 }
  0x6e   :  { %929 = vmatpush.bf16.msra.mxu3 %v1436_v19 }
  0x6f   :  { %891 = vmatpush.bf16.msra.mxu0 %v1411_v16 }
  0x70   :  { %904 = vmatpush.bf16.msra.mxu1 %v1419_v17 }
  0x71   :  { %917 = vmatpush.bf16.msra.mxu2 %v1427_v22 }
  0x72   :  { %930 = vmatpush.bf16.msra.mxu3 %v1435_v23 }
  0x73   :  { %892 = vmatpush.bf16.msra.mxu0 %v1410_v20 }
  0x74   :  { %905 = vmatpush.bf16.msra.mxu1 %v1418_v21 }
  0x75   :  { %918 = vmatpush.bf16.msra.mxu2 %v1426_v27 }
  0x76   :  { %931 = vmatpush.bf16.msra.mxu3 %v1434_v28 }
  0x77   :  { %893 = vmatpush.bf16.msra.mxu0 %v1409_v24 }
  0x78   :  { %906 = vmatpush.bf16.msra.mxu1 %v1417_v25 }
  0x79   :  { %919 = vmatpush.bf16.msra.mxu2 %v1425_v32 }
  0x7a   :  { %932 = vmatpush.bf16.msra.mxu3 %v1433_v33 }
  0x7b   :  { %894 = vmatpush.bf16.msra.mxu0 %v1408_v30 }
  0x7c   :  { %907 = vmatpush.bf16.msra.mxu1 %v1416_v31 }
  0x7d   :  { %920 = vmatpush.bf16.msra.mxu2 %v1424_v37 }
  0x7e   :  { %933 = vmatpush.bf16.msra.mxu3 %v1432_v38 }
  0xbb   :  { %v350_v26 = vpop.f32.mrf.mxu0 }
  0xbc   :  { %v363_v29 = vpop.f32.mrf.mxu1 }
  0xc3   :  { %v376_v34 = vpop.f32.mrf.mxu2  ;;  %v352_v36 = vpop.f32.mrf.mxu0 }
  0xc4   :  { %v365_v39 = vpop.f32.mrf.mxu1 }
  0xc5   :  { %v389_v35 = vpop.f32.mrf.mxu3 }
  0xcb   :  { %v378_v40 = vpop.f32.mrf.mxu2 }
  0xcd   :  { %v391_v41 = vpop.f32.mrf.mxu3 }
  0xdb   :  { %v562_v44 = vpop.f32.mrf.mxu0 }
  0xdc   :  { %v563_v46 = vadd.f32 %v562_v44, %v350_v26  ;;  %v575_v47 = vpop.f32.mrf.mxu1 }
  0xdd   :  { %v576_v48 = vadd.f32 %v575_v47, %v363_v29 }
  0xde   :  { %v615_v49 = vadd.f32 %v607_v43, %v563_v46 }
  0xdf   :  { %v616_v50 = vadd.f32 %v608_v45, %v576_v48 }
  0xe0   :  { %v619_v51 = vmax.f32 %v615_v49, 0.0 }
  0xe1   :  { %v620_v52 = vmax.f32 %v616_v50, 0.0 }
  0xe2   :  { %v623_v54 = vpack.c.bf16 %v619_v51, %v619_v51 }
  0xe3   :  { %v588_v55 = vpop.f32.mrf.mxu2  ;;  %v624_v57 = vpack.c.bf16 %v620_v52, %v620_v52  ;;  %v564_v60 = vpop.f32.mrf.mxu0 }
  0xe4   :  { %v589_v58 = vadd.f32 %v588_v55, %v376_v34  ;;  %v601_v59 = vpop.f32.mrf.mxu3  ;;  %895 = vmatmul.bf16.vlgmr.msra.gmra.mxu0 %v623_v54  ;;  %v577_v62 = vpop.f32.mrf.mxu1 }
  0xe5   :  { %v602_v61 = vadd.f32 %v601_v59, %v389_v35  ;;  %908 = vmatmul.bf16.vlgmr.msra.gmra.mxu1 %v624_v57 }
  0xe6   :  { %v617_v63 = vadd.f32 %v609_v53, %v589_v58 }
  0xe7   :  { %v618_v0 = vadd.f32 %v610_v56, %v602_v61 }
  0xe8   :  { %v621_v1 = vmax.f32 %v617_v63, 0.0 }
  0xe9   :  { %v622_v2 = vmax.f32 %v618_v0, 0.0 }
  0xea   :  { %v625_v3 = vpack.c.bf16 %v621_v1, %v621_v1 }
  0xeb   :  { %v626_v4 = vpack.c.bf16 %v622_v2, %v622_v2  ;;  %v590_v5 = vpop.f32.mrf.mxu2 }
  0xec   :  { %v603_v6 = vpop.f32.mrf.mxu3  ;;  %921 = vmatmul.bf16.vlgmr.msra.gmra.mxu2 %v625_v3 }
  0xed   :  { %934 = vmatmul.bf16.vlgmr.msra.gmra.mxu3 %v626_v4 }
 0x161   :  { %v896_v7 = vpop.f32.mrf.mxu0 }
 0x162   :  { %v909_v8 = vpop.f32.mrf.mxu1  ;;  %v897_v10 = vadd.f32 %v1451_v9, %v896_v7 }
 0x164   :  { %v910_v13 = vadd.f32 %v909_v8, %v897_v10 }
 0x169   :  { %v898_v11 = vpop.f32.mrf.mxu0 }
 0x16a   :  { %v911_v12 = vpop.f32.mrf.mxu1 }
 0x16f   :  { %v922_v14 = vpop.f32.mrf.mxu2 }
 0x170   :  { %v923_v15 = vadd.f32 %v922_v14, %v910_v13  ;;  %v935_v16 = vpop.f32.mrf.mxu3 }
 0x172   :  { %v936_v17 = vadd.f32 %v935_v16, %v923_v15 }
 0x174   :  { %939 = vst [vmem:[#allocation13] sm:$0xff] %v936_v17 }
 0x175   :  { %950 = dma.vmem_to_hbm [thread:$0]  %s946_s9, 128, %s948_s12, [#allocation4]  }
 0x177   :  { %v924_v18 = vpop.f32.mrf.mxu2 }
 0x178   :  { %v937_v19 = vpop.f32.mrf.mxu3 }
 0x179   :  { %1628 = dma.done.wait [#allocation4], 128  }
 0x17a   :  { %1629 = vsyncadd [#allocation4], 4294967168 }
 0x17b   :  { %955 = vsyncpa [#allocation3], 1 }
 0x17c   :  { %956 = vsyncpa [#allocation6], 1 }
 0x17d   :  { %957 = vsyncpa [#allocation9], 1 }
 0x17e   :  { %958 = vsyncpa [#allocation12], 1 }
 0x17f   :  { %959 = vsyncpa [#allocation4], 1 }

</bundles_post_ra>
